<compile_context>
chip_gen: v7x
topology: tpu7x:2x2x1
jax: 0.10.0
libtpu: 0.0.40
codegen_flags: <defaults>
</compile_context>

<pallas_src>
import jax
import jax.numpy as jnp
from jax.experimental import pallas as pl
from jax.experimental.pallas import tpu as pltpu

IN_DIM = 3
CIN_PAD = 8            # pad input channels 3 -> 8 (layout-friendly first layer)
N_CLASSES = 2
NOUT_PAD = 128         # lane-dense output slab; wrapper slices [:, :N_CLASSES]
EPS = 1e-5             # PyTorch BatchNorm1d default eps


# --------------------------------------------------------------------------
# Kernel 1: streaming conv stack + running max-pool
# --------------------------------------------------------------------------
def _stream_kernel(x_ref,
                   w1, b1, w2, b2, w3, b3, w4, b4, w5, b5,
                   feat_ref):
    """Grid = (splits, B, point_tiles).

    x_ref:    (1, TN, CIN_PAD) bf16 point tile.
    feat_ref: (1, 1, 8, 1024) f32 output block, resident across the point-tile
              axis — running (8-sublane partial) max over points.
    """
    t = pl.program_id(2)

    @pl.when(t == 0)
    def _init():
        feat_ref[...] = jnp.full_like(feat_ref, -jnp.inf)

    def fused(h, w_ref, b_ref):
        # bf16 matmul on the MXU, f32 accumulation; BN scale is pre-folded
        # into w, so the epilogue is bias + ReLU only; carry bf16 onward.
        y = jnp.dot(h, w_ref[...], preferred_element_type=jnp.float32)
        return jnp.maximum(y + b_ref[...], 0.0).astype(jnp.bfloat16)

    h = x_ref[0]                        # (TN, CIN_PAD) bf16
    h = fused(h, w1, b1)                # (TN, 64)
    h = fused(h, w2, b2)                # (TN, 64)
    h = fused(h, w3, b3)                # (TN, 64)
    h = fused(h, w4, b4)                # (TN, 128)
    # conv5: keep the pooled feature path in f32 for the max accumulation.
    y = jnp.dot(h, w5[...], preferred_element_type=jnp.float32)   # (TN, 1024)
    y = jnp.maximum(y + b5[...], 0.0)

    tn = y.shape[0]
    if tn % 8 == 0:
        # Elementwise vmax across groups of 8 sublanes; the final 8->1
        # cross-sublane reduce is deferred to the wrapper.
        part = jnp.max(y.reshape(tn // 8, 8, 1024), axis=0)       # (8, 1024)
    else:
        part = jnp.broadcast_to(jnp.max(y, axis=0, keepdims=True), (8, 1024))
    feat_ref[...] = jnp.maximum(feat_ref[...], part.reshape(feat_ref.shape))


# --------------------------------------------------------------------------
# Kernel 2: classification head (fc1 + fc2 with folded BN + ReLU, then fc3)
# --------------------------------------------------------------------------
def _head_kernel(g_ref, f1w, f1b, f2w, f2b, f3w, f3b, out_ref):
    """Grid = (batch_tiles,).  g_ref: (TB, 1024) bf16, out_ref: (TB, 128) f32."""
    def fused(h, w_ref, b_ref):
        y = jnp.dot(h, w_ref[...], preferred_element_type=jnp.float32)
        return jnp.maximum(y + b_ref[...], 0.0).astype(jnp.bfloat16)

    h = g_ref[...]                      # (TB, 1024) bf16
    h = fused(h, f1w, f1b)              # (TB, 512)
    h = fused(h, f2w, f2b)              # (TB, 256)
    out_ref[...] = jnp.dot(h, f3w[...],
                           preferred_element_type=jnp.float32) + f3b[...]


# --------------------------------------------------------------------------
# Sizing helpers
# --------------------------------------------------------------------------
def _vmem_capacity_bytes():
    try:
        info = pltpu.get_tpu_info()
        cap = int(getattr(info, "vmem_capacity_bytes", 0))
        if cap > 0:
            return cap
    except Exception:
        pass
    return 64 << 20                     # conservative (v7x) fallback


def _choose_point_tile(n, capacity):
    """Largest tile dividing N under a capacity-derived ceiling."""
    tmax = 2048 if capacity > (96 << 20) else 1024   # v5e/v6e vs v7x
    for t in (2048, 1024, 512, 256, 128, 64, 32, 16, 8):
        if t <= tmax and n % t == 0:
            return t
    return n                            # fallback: full-extent block (legal)


def _choose_splits(batch, nt):
    """Split the point-tile axis so both v7x TensorCores are busy at small B."""
    if batch % 2 == 1 and nt % 2 == 0:
        return 2
    return 1


def _choose_batch_tile(b):
    for t in (256, 128, 64, 32, 16, 8):
        if b % t == 0:
            return t
    return b


def _vmem_limit_bytes(conv_params, tn, capacity):
    wbytes = sum(int(p.size) * p.dtype.itemsize for p in conv_params)
    x_tile = tn * CIN_PAD * 2                       # bf16 streamed input
    act = tn * 1024 * 4 * 2                         # f32 conv5 activation (+copy)
    act += tn * (64 * 3 + 128) * 2                  # bf16 inter-layer activations
    feat = 8 * 1024 * 4 * 2
    est = 2 * wbytes + 2 * x_tile + act + feat + (8 << 20)
    cap = int(0.6 * capacity)
    return int(min(max(est, 16 << 20), cap))


# --------------------------------------------------------------------------
# Wrapper
# --------------------------------------------------------------------------
def pointnet_forward(x, conv_params, head_params, *, tile_points=None):
    B, N, Cin = x.shape
    assert Cin == IN_DIM
    capacity = _vmem_capacity_bytes()
    tn = tile_points or _choose_point_tile(N, capacity)
    assert N % tn == 0, (N, tn)
    nt = N // tn
    splits = _choose_splits(B, nt)
    nt_s = nt // splits

    # Channel pad 3 -> 8 fused with the bf16 cast (padded w1 rows are zero).
    xp = jnp.pad(x, ((0, 0), (0, 0), (0, CIN_PAD - Cin))).astype(jnp.bfloat16)

    in_specs = [pl.BlockSpec((1, tn, CIN_PAD),
                             lambda s, b, t, _nts=nt_s: (b, s * _nts + t, 0))]
    # Conv weights/biases: full-array blocks, resident across the grid.
    in_specs += [pl.BlockSpec(p.shape, lambda s, b, t: (0, 0))
                 for p in conv_params]
    out_spec = pl.BlockSpec((1, 1, 8, 1024), lambda s, b, t: (s, b, 0, 0))

    part = pl.pallas_call(
        _stream_kernel,
        out_shape=jax.ShapeDtypeStruct((splits, B, 8, 1024), jnp.float32),
        grid_spec=pltpu.PrefetchScalarGridSpec(
            num_scalar_prefetch=0,
            grid=(splits, B, nt_s),
            in_specs=in_specs,
            out_specs=out_spec),
        compiler_params=pltpu.CompilerParams(
            dimension_semantics=("parallel", "parallel", "arbitrary"),
            vmem_limit_bytes=_vmem_limit_bytes(conv_params, tn, capacity)),
    )(xp, *conv_params)

    # Merge split partials + 8->1 sublane reduce (tiny XLA op), keep f32 pool.
    feat = jnp.max(part, axis=(0, 2)).astype(jnp.bfloat16)       # (B, 1024)

    tb = _choose_batch_tile(B)
    head_in = [pl.BlockSpec((tb, 1024), lambda i: (i, 0))]
    head_in += [pl.BlockSpec(p.shape, lambda i: (0, 0)) for p in head_params]
    out = pl.pallas_call(
        _head_kernel,
        out_shape=jax.ShapeDtypeStruct((B, NOUT_PAD), jnp.float32),
        grid_spec=pltpu.PrefetchScalarGridSpec(
            num_scalar_prefetch=0,
            grid=(B // tb,),
            in_specs=head_in,
            out_specs=pl.BlockSpec((tb, NOUT_PAD), lambda i: (i, 0))),
        compiler_params=pltpu.CompilerParams(
            dimension_semantics=("parallel",)),
    )(feat, *head_params)
    return out[:, :N_CLASSES]


# --------------------------------------------------------------------------
# Parameters (BN scale folded into bf16 weights; mean/beta folded into bias)
# --------------------------------------------------------------------------
def init_params(key):
    conv_dims = [(IN_DIM, 64), (64, 64), (64, 64), (64, 128), (128, 1024)]
    head_dims = [(1024, 512), (512, 256)]
    last_fc = (256, N_CLASSES)

    def layer(k, cin, cout, with_bn, pad_in=0, pad_out=0):
        ks = jax.random.split(k, 6)
        w = jax.random.normal(ks[0], (cin, cout), jnp.float32) / jnp.sqrt(cin)
        b = 0.1 * jax.random.normal(ks[1], (1, cout), jnp.float32)
        if with_bn:
            gamma = 1.0 + 0.1 * jax.random.normal(ks[2], (1, cout), jnp.float32)
            beta = 0.1 * jax.random.normal(ks[3], (1, cout), jnp.float32)
            mean = 0.1 * jax.random.normal(ks[4], (1, cout), jnp.float32)
            var = 1.0 + 0.5 * jax.random.uniform(ks[5], (1, cout), jnp.float32)
            scale = gamma / jnp.sqrt(var + EPS)
            # Fold in f32 BEFORE the bf16 cast (single rounding).
            w = w * scale
            b = (b - mean) * scale + beta
        w = jnp.pad(w, ((0, pad_in), (0, pad_out))).astype(jnp.bfloat16)
        b = jnp.pad(b, ((0, 0), (0, pad_out)))
        return [w, b]

    conv_params, head_params = [], []
    for i, (cin, cout) in enumerate(conv_dims):
        key, sub = jax.random.split(key)
        conv_params += layer(sub, cin, cout, True,
                             pad_in=(CIN_PAD - IN_DIM) if i == 0 else 0)
    for (cin, cout) in head_dims:
        key, sub = jax.random.split(key)
        head_params += layer(sub, cin, cout, True)
    key, sub = jax.random.split(key)
    head_params += layer(sub, *last_fc, False, pad_out=NOUT_PAD - N_CLASSES)
    return conv_params, head_params


# --------------------------------------------------------------------------
# Pure-JAX reference mirroring kernel numerics
# --------------------------------------------------------------------------
def reference_forward(x, conv_params, head_params):
    B, N, Cin = x.shape
    h = jnp.pad(x, ((0, 0), (0, 0), (0, CIN_PAD - Cin))).astype(jnp.bfloat16)
    h = h.reshape(B * N, CIN_PAD)
    for i in range(4):                                  # conv1..conv4
        w, b = conv_params[2 * i:2 * i + 2]
        y = jnp.dot(h, w, preferred_element_type=jnp.float32)
        h = jnp.maximum(y + b, 0.0).astype(jnp.bfloat16)
    w, b = conv_params[8:10]                            # conv5 (f32 output)
    y = jnp.dot(h, w, preferred_element_type=jnp.float32)
    y = jnp.maximum(y + b, 0.0)
    g = y.reshape(B, N, 1024).max(axis=1).astype(jnp.bfloat16)   # max-pool
    for i in range(2):                                  # fc1, fc2
        w, b = head_params[2 * i:2 * i + 2]
        yy = jnp.dot(g, w, preferred_element_type=jnp.float32)
        g = jnp.maximum(yy + b, 0.0).astype(jnp.bfloat16)
    w, b = head_params[4:6]                             # fc3
    out = jnp.dot(g, w, preferred_element_type=jnp.float32) + b
    return out[:, :N_CLASSES]


if __name__ == "__main__":
    key = jax.random.PRNGKey(0)
    k_params, k_x = jax.random.split(key)

    conv_params, head_params = init_params(k_params)
    B, N = 2, 8                                         # batch=2, n_points=8, in_dim=3
    x = jax.random.normal(k_x, (B, N, IN_DIM), jnp.float32)

    out = jax.block_until_ready(pointnet_forward(x, conv_params, head_params))
    ref = reference_forward(x, conv_params, head_params)

    assert out.shape == (B, N_CLASSES), out.shape
    assert jnp.allclose(out, ref, rtol=1e-2, atol=1e-2), (out, ref)

    print("KERNEL_OK")
</pallas_src>

<mosaic_0001>
module attributes {stable_mosaic.version = 11 : i64} {
  func.func @_stream_kernel(%arg0: i32, %arg1: i32, %arg2: i32, %arg3: memref<1x8x8xbf16, #tpu.memory_space<vmem>>, %arg4: memref<8x64xbf16, #tpu.memory_space<vmem>>, %arg5: memref<1x64xf32, #tpu.memory_space<vmem>>, %arg6: memref<64x64xbf16, #tpu.memory_space<vmem>>, %arg7: memref<1x64xf32, #tpu.memory_space<vmem>>, %arg8: memref<64x64xbf16, #tpu.memory_space<vmem>>, %arg9: memref<1x64xf32, #tpu.memory_space<vmem>>, %arg10: memref<64x128xbf16, #tpu.memory_space<vmem>>, %arg11: memref<1x128xf32, #tpu.memory_space<vmem>>, %arg12: memref<128x1024xbf16, #tpu.memory_space<vmem>>, %arg13: memref<1x1024xf32, #tpu.memory_space<vmem>>, %arg14: memref<1x1x8x1024xf32, #tpu.memory_space<vmem>>) attributes {dimension_semantics = [#tpu.dimension_semantics<parallel>, #tpu.dimension_semantics<parallel>, #tpu.dimension_semantics<arbitrary>], iteration_bounds = array<i64: 1, 2, 1>, scalar_prefetch = 0 : i64, scratch_operands = 0 : i64, tpu.core_type = #tpu.core_type<tc>, window_params = [{transform_indices = @transform_0, window_bounds = array<i64: 1, 8, 8>}, {pipeline_mode = #tpu.pipeline_mode<synchronous>, transform_indices = @transform_1, window_bounds = array<i64: 8, 64>}, {pipeline_mode = #tpu.pipeline_mode<synchronous>, transform_indices = @transform_2, window_bounds = array<i64: 1, 64>}, {pipeline_mode = #tpu.pipeline_mode<synchronous>, transform_indices = @transform_3, window_bounds = array<i64: 64, 64>}, {pipeline_mode = #tpu.pipeline_mode<synchronous>, transform_indices = @transform_4, window_bounds = array<i64: 1, 64>}, {pipeline_mode = #tpu.pipeline_mode<synchronous>, transform_indices = @transform_5, window_bounds = array<i64: 64, 64>}, {pipeline_mode = #tpu.pipeline_mode<synchronous>, transform_indices = @transform_6, window_bounds = array<i64: 1, 64>}, {pipeline_mode = #tpu.pipeline_mode<synchronous>, transform_indices = @transform_7, window_bounds = array<i64: 64, 128>}, {pipeline_mode = #tpu.pipeline_mode<synchronous>, transform_indices = @transform_8, window_bounds = array<i64: 1, 128>}, {pipeline_mode = #tpu.pipeline_mode<synchronous>, transform_indices = @transform_9, window_bounds = array<i64: 128, 1024>}, {pipeline_mode = #tpu.pipeline_mode<synchronous>, transform_indices = @transform_10, window_bounds = array<i64: 1, 1024>}, {transform_indices = @transform_11, window_bounds = array<i64: 1, 1, 8, 1024>}]} {
    %c0_i32 = arith.constant 0 : i32
    %0 = arith.cmpi eq, %arg2, %c0_i32 : i32
    %1 = arith.extui %0 : i1 to i32
    %c0_i32_0 = arith.constant 0 : i32
    %2 = arith.cmpi ne, %1, %c0_i32_0 : i32
    scf.if %2 {
      %cst_41 = arith.constant 0xFF800000 : f32
      %50 = vector.broadcast %cst_41 : f32 to vector<1x1x8x1024xf32>
      %c0_42 = arith.constant 0 : index
      %c0_43 = arith.constant 0 : index
      %c0_44 = arith.constant 0 : index
      %c0_45 = arith.constant 0 : index
      %51 = vector.load %arg14[%c0_42, %c0_43, %c0_44, %c0_45] : memref<1x1x8x1024xf32, #tpu.memory_space<vmem>>, vector<1x1x8x1024xf32>
      tpu.vector_store %arg14[%c0_42, %c0_43, %c0_44, %c0_45], %50 {strides = array<i32>} : memref<1x1x8x1024xf32, #tpu.memory_space<vmem>>, vector<1x1x8x1024xf32>,
    } else {
    }
    %c0 = arith.constant 0 : index
    %c0_1 = arith.constant 0 : index
    %c0_2 = arith.constant 0 : index
    %3 = vector.load %arg3[%c0, %c0_1, %c0_2] : memref<1x8x8xbf16, #tpu.memory_space<vmem>>, vector<1x8x8xbf16>
    %4 = vector.shape_cast %3 : vector<1x8x8xbf16> to vector<8x8xbf16>
    %c0_3 = arith.constant 0 : index
    %c0_4 = arith.constant 0 : index
    %5 = vector.load %arg4[%c0_3, %c0_4] : memref<8x64xbf16, #tpu.memory_space<vmem>>, vector<8x64xbf16>
    %cst = arith.constant dense<0.000000e+00> : vector<8x64xf32>
    %6 = tpu.matmul %4, %5, %cst {dimension_numbers = #tpu.dot_dimension_numbers<[1], [0], [0], [1], [0, 0, 1, 1], [], []>} : vector<8x8xbf16>, vector<8x64xbf16>, vector<8x64xf32> -> vector<8x64xf32>
    %c0_5 = arith.constant 0 : index
    %c0_6 = arith.constant 0 : index
    %7 = vector.load %arg5[%c0_5, %c0_6] : memref<1x64xf32, #tpu.memory_space<vmem>>, vector<1x64xf32>
    %8 = vector.broadcast %7 : vector<1x64xf32> to vector<8x64xf32>
    %9 = arith.addf %6, %8 : vector<8x64xf32>
    %cst_7 = arith.constant 0.000000e+00 : f32
    %10 = vector.broadcast %cst_7 : f32 to vector<8x64xf32>
    %11 = arith.maximumf %9, %10 : vector<8x64xf32>
    %12 = arith.truncf %11 : vector<8x64xf32> to vector<8x64xbf16>
    %c0_8 = arith.constant 0 : index
    %c0_9 = arith.constant 0 : index
    %13 = vector.load %arg6[%c0_8, %c0_9] : memref<64x64xbf16, #tpu.memory_space<vmem>>, vector<64x64xbf16>
    %cst_10 = arith.constant dense<0.000000e+00> : vector<8x64xf32>
    %14 = tpu.matmul %12, %13, %cst_10 {dimension_numbers = #tpu.dot_dimension_numbers<[1], [0], [0], [1], [0, 0, 1, 1], [], []>} : vector<8x64xbf16>, vector<64x64xbf16>, vector<8x64xf32> -> vector<8x64xf32>
    %c0_11 = arith.constant 0 : index
    %c0_12 = arith.constant 0 : index
    %15 = vector.load %arg7[%c0_11, %c0_12] : memref<1x64xf32, #tpu.memory_space<vmem>>, vector<1x64xf32>
    %16 = vector.broadcast %15 : vector<1x64xf32> to vector<8x64xf32>
    %17 = arith.addf %14, %16 : vector<8x64xf32>
    %cst_13 = arith.constant 0.000000e+00 : f32
    %18 = vector.broadcast %cst_13 : f32 to vector<8x64xf32>
    %19 = arith.maximumf %17, %18 : vector<8x64xf32>
    %20 = arith.truncf %19 : vector<8x64xf32> to vector<8x64xbf16>
    %c0_14 = arith.constant 0 : index
    %c0_15 = arith.constant 0 : index
    %21 = vector.load %arg8[%c0_14, %c0_15] : memref<64x64xbf16, #tpu.memory_space<vmem>>, vector<64x64xbf16>
    %cst_16 = arith.constant dense<0.000000e+00> : vector<8x64xf32>
    %22 = tpu.matmul %20, %21, %cst_16 {dimension_numbers = #tpu.dot_dimension_numbers<[1], [0], [0], [1], [0, 0, 1, 1], [], []>} : vector<8x64xbf16>, vector<64x64xbf16>, vector<8x64xf32> -> vector<8x64xf32>
    %c0_17 = arith.constant 0 : index
    %c0_18 = arith.constant 0 : index
    %23 = vector.load %arg9[%c0_17, %c0_18] : memref<1x64xf32, #tpu.memory_space<vmem>>, vector<1x64xf32>
    %24 = vector.broadcast %23 : vector<1x64xf32> to vector<8x64xf32>
    %25 = arith.addf %22, %24 : vector<8x64xf32>
    %cst_19 = arith.constant 0.000000e+00 : f32
    %26 = vector.broadcast %cst_19 : f32 to vector<8x64xf32>
    %27 = arith.maximumf %25, %26 : vector<8x64xf32>
    %28 = arith.truncf %27 : vector<8x64xf32> to vector<8x64xbf16>
    %c0_20 = arith.constant 0 : index
    %c0_21 = arith.constant 0 : index
    %29 = vector.load %arg10[%c0_20, %c0_21] : memref<64x128xbf16, #tpu.memory_space<vmem>>, vector<64x128xbf16>
    %cst_22 = arith.constant dense<0.000000e+00> : vector<8x128xf32>
    %30 = tpu.matmul %28, %29, %cst_22 {dimension_numbers = #tpu.dot_dimension_numbers<[1], [0], [0], [1], [0, 0, 1, 1], [], []>} : vector<8x64xbf16>, vector<64x128xbf16>, vector<8x128xf32> -> vector<8x128xf32>
    %c0_23 = arith.constant 0 : index
    %c0_24 = arith.constant 0 : index
    %31 = vector.load %arg11[%c0_23, %c0_24] : memref<1x128xf32, #tpu.memory_space<vmem>>, vector<1x128xf32>
    %32 = vector.broadcast %31 : vector<1x128xf32> to vector<8x128xf32>
    %33 = arith.addf %30, %32 : vector<8x128xf32>
    %cst_25 = arith.constant 0.000000e+00 : f32
    %34 = vector.broadcast %cst_25 : f32 to vector<8x128xf32>
    %35 = arith.maximumf %33, %34 : vector<8x128xf32>
    %36 = arith.truncf %35 : vector<8x128xf32> to vector<8x128xbf16>
    %c0_26 = arith.constant 0 : index
    %c0_27 = arith.constant 0 : index
    %37 = vector.load %arg12[%c0_26, %c0_27] : memref<128x1024xbf16, #tpu.memory_space<vmem>>, vector<128x1024xbf16>
    %cst_28 = arith.constant dense<0.000000e+00> : vector<8x1024xf32>
    %38 = tpu.matmul %36, %37, %cst_28 {dimension_numbers = #tpu.dot_dimension_numbers<[1], [0], [0], [1], [0, 0, 1, 1], [], []>} : vector<8x128xbf16>, vector<128x1024xbf16>, vector<8x1024xf32> -> vector<8x1024xf32>
    %c0_29 = arith.constant 0 : index
    %c0_30 = arith.constant 0 : index
    %39 = vector.load %arg13[%c0_29, %c0_30] : memref<1x1024xf32, #tpu.memory_space<vmem>>, vector<1x1024xf32>
    %40 = vector.broadcast %39 : vector<1x1024xf32> to vector<8x1024xf32>
    %41 = arith.addf %38, %40 : vector<8x1024xf32>
    %cst_31 = arith.constant 0.000000e+00 : f32
    %42 = vector.broadcast %cst_31 : f32 to vector<8x1024xf32>
    %43 = arith.maximumf %41, %42 : vector<8x1024xf32>
    %44 = vector.shape_cast %43 : vector<8x1024xf32> to vector<1x8x1024xf32>
    %cst_32 = arith.constant dense<0xFF800000> : vector<8x1024xf32>
    %45 = vector.multi_reduction <maximumf>, %44, %cst_32 [0] : vector<1x8x1024xf32> to vector<8x1024xf32>
    %c0_33 = arith.constant 0 : index
    %c0_34 = arith.constant 0 : index
    %c0_35 = arith.constant 0 : index
    %c0_36 = arith.constant 0 : index
    %46 = vector.load %arg14[%c0_33, %c0_34, %c0_35, %c0_36] : memref<1x1x8x1024xf32, #tpu.memory_space<vmem>>, vector<1x1x8x1024xf32>
    %47 = vector.shape_cast %45 : vector<8x1024xf32> to vector<1x1x8x1024xf32>
    %48 = arith.maximumf %46, %47 : vector<1x1x8x1024xf32>
    %c0_37 = arith.constant 0 : index
    %c0_38 = arith.constant 0 : index
    %c0_39 = arith.constant 0 : index
    %c0_40 = arith.constant 0 : index
    %49 = vector.load %arg14[%c0_37, %c0_38, %c0_39, %c0_40] : memref<1x1x8x1024xf32, #tpu.memory_space<vmem>>, vector<1x1x8x1024xf32>
    tpu.vector_store %arg14[%c0_37, %c0_38, %c0_39, %c0_40], %48 {strides = array<i32>} : memref<1x1x8x1024xf32, #tpu.memory_space<vmem>>, vector<1x1x8x1024xf32>,
    return
  }
  func.func @transform_0(%arg0: i32, %arg1: i32, %arg2: i32) -> (i32, i32, i32) {
    %c1_i32 = arith.constant 1 : i32
    %0 = arith.muli %arg0, %c1_i32 : i32
    %1 = arith.addi %0, %arg2 : i32
    %c0_i32 = arith.constant 0 : i32
    %c0_i32_0 = arith.constant 0 : i32
    return %arg1, %1, %c0_i32 : i32, i32, i32
  }
  func.func @transform_1(%arg0: i32, %arg1: i32, %arg2: i32) -> (i32, i32) {
    %c0_i32 = arith.constant 0 : i32
    %c0_i32_0 = arith.constant 0 : i32
    %c0_i32_1 = arith.constant 0 : i32
    return %c0_i32, %c0_i32_0 : i32, i32
  }
  func.func @transform_2(%arg0: i32, %arg1: i32, %arg2: i32) -> (i32, i32) {
    %c0_i32 = arith.constant 0 : i32
    %c0_i32_0 = arith.constant 0 : i32
    %c0_i32_1 = arith.constant 0 : i32
    return %c0_i32, %c0_i32_0 : i32, i32
  }
  func.func @transform_3(%arg0: i32, %arg1: i32, %arg2: i32) -> (i32, i32) {
    %c0_i32 = arith.constant 0 : i32
    %c0_i32_0 = arith.constant 0 : i32
    %c0_i32_1 = arith.constant 0 : i32
    return %c0_i32, %c0_i32_0 : i32, i32
  }
  func.func @transform_4(%arg0: i32, %arg1: i32, %arg2: i32) -> (i32, i32) {
    %c0_i32 = arith.constant 0 : i32
    %c0_i32_0 = arith.constant 0 : i32
    %c0_i32_1 = arith.constant 0 : i32
    return %c0_i32, %c0_i32_0 : i32, i32
  }
  func.func @transform_5(%arg0: i32, %arg1: i32, %arg2: i32) -> (i32, i32) {
    %c0_i32 = arith.constant 0 : i32
    %c0_i32_0 = arith.constant 0 : i32
    %c0_i32_1 = arith.constant 0 : i32
    return %c0_i32, %c0_i32_0 : i32, i32
  }
  func.func @transform_6(%arg0: i32, %arg1: i32, %arg2: i32) -> (i32, i32) {
    %c0_i32 = arith.constant 0 : i32
    %c0_i32_0 = arith.constant 0 : i32
    %c0_i32_1 = arith.constant 0 : i32
    return %c0_i32, %c0_i32_0 : i32, i32
  }
  func.func @transform_7(%arg0: i32, %arg1: i32, %arg2: i32) -> (i32, i32) {
    %c0_i32 = arith.constant 0 : i32
    %c0_i32_0 = arith.constant 0 : i32
    %c0_i32_1 = arith.constant 0 : i32
    return %c0_i32, %c0_i32_0 : i32, i32
  }
  func.func @transform_8(%arg0: i32, %arg1: i32, %arg2: i32) -> (i32, i32) {
    %c0_i32 = arith.constant 0 : i32
    %c0_i32_0 = arith.constant 0 : i32
    %c0_i32_1 = arith.constant 0 : i32
    return %c0_i32, %c0_i32_0 : i32, i32
  }
  func.func @transform_9(%arg0: i32, %arg1: i32, %arg2: i32) -> (i32, i32) {
    %c0_i32 = arith.constant 0 : i32
    %c0_i32_0 = arith.constant 0 : i32
    %c0_i32_1 = arith.constant 0 : i32
    return %c0_i32, %c0_i32_0 : i32, i32
  }
  func.func @transform_10(%arg0: i32, %arg1: i32, %arg2: i32) -> (i32, i32) {
    %c0_i32 = arith.constant 0 : i32
    %c0_i32_0 = arith.constant 0 : i32
    %c0_i32_1 = arith.constant 0 : i32
    return %c0_i32, %c0_i32_0 : i32, i32
  }
  func.func @transform_11(%arg0: i32, %arg1: i32, %arg2: i32) -> (i32, i32, i32, i32) {
    %c0_i32 = arith.constant 0 : i32
    %c0_i32_0 = arith.constant 0 : i32
    %c0_i32_1 = arith.constant 0 : i32
    return %arg0, %arg1, %c0_i32, %c0_i32_0 : i32, i32, i32, i32
  }
}

</mosaic_0001>

<bundles_post_ra>
// kernel: tpu_custom_call.1
= control target key start
LH: loop header
LB: loop body
LE: loop exit
PB: predicated region body
PF: predicated region fallthrough
CT: control target
= control target key end

     0   :  { %s2616_s0 = inlined_call_operand.hbm [shape: bf16[2,8,8], index: 0, kind: input, shape index: {}]   ;;  %s2617_s1 = inlined_call_operand.hbm [shape: bf16[8,64], index: 1, kind: input, shape index: {}]   ;;  %s2618_s2 = inlined_call_operand.vmem [shape: f32[1,64], index: 2, kind: input, shape index: {}]   ;;  %s2619_s3 = inlined_call_operand.hbm [shape: bf16[64,64], index: 3, kind: input, shape index: {}]   ;;  %s2620_s4 = inlined_call_operand.vmem [shape: f32[1,64], index: 4, kind: input, shape index: {}]   ;;  %s2621_s5 = inlined_call_operand.hbm [shape: bf16[64,64], index: 5, kind: input, shape index: {}]   ;;  %s2622_s6 = inlined_call_operand.vmem [shape: f32[1,64], index: 6, kind: input, shape index: {}]   ;;  %s2623_s7 = inlined_call_operand.hbm [shape: bf16[64,128], index: 7, kind: input, shape index: {}]   ;;  %s2624_s8 = inlined_call_operand.vmem [shape: f32[1,128], index: 8, kind: input, shape index: {}]   ;;  %s2625_s9 = inlined_call_operand.hbm [shape: bf16[128,1024], index: 9, kind: input, shape index: {}]   ;;  %s2626_s10 = inlined_call_operand.vmem [shape: f32[1,1024], index: 10, kind: input, shape index: {}]   ;;  %s2627_s11 = inlined_call_operand.hbm [shape: f32[1,2,8,1024], index: 11, kind: output, shape index: {}]  }
   0x1   :  { %2634 = sst [smem:[#allocation20_spill]] %s2617_s1 }
   0x2   :  { %2635 = sst [smem:[#allocation21_spill]] %s2621_s5 }
   0x3   :  { %2636 = sst [smem:[#allocation22_spill]] %s2624_s8 }
   0x4   :  { %2637 = sst [smem:[#allocation23_spill]] %s2626_s10 }
   0x5   :  { %2638 = sst [smem:[#allocation24_spill]] %s2627_s11 }
   0x6   :  { %16 = vsyncpa [#allocation3], 0 }
   0x7   :  { %18 = vsyncpa [#allocation3 + $0x1], 0 }
   0x8   :  { %19 = vsyncpa [#allocation6], 0 }
   0x9   :  { %20 = vsyncpa [#allocation9], 0 }
   0xa   :  { %21 = vsyncpa [#allocation12], 0 }
   0xb   :  { %22 = vsyncpa [#allocation4], 0 }
   0xc   :  { %24 = vsyncpa [#allocation4 + $0x1], 0  ;;  %s2240_s17 = smov 0   ;;  %s2242_s18 = smov 0  }
   0xd   :  { %s2244_s19 = smov 0   ;;  %s2246_s20 = smov 0  }
   0xe   :  { %s2248_s21 = smov 0   ;;  %s2250_s22 = smov 0  }
   0xf LB: > { %2639 = sst [smem:[#allocation19_spill]] %s2156_s20  ;;  %s2628_s23 = sadd.s32 4294967295, %s2164_s22   ;;  %s2164_s22 = sphi %s2250_s22, %s30_s22   ;;  %s2160_s21 = sphi %s2248_s21, %s2666_s21   ;;  %s2156_s20 = sphi %s2246_s20, %s2665_s20   ;;  %s2152_s19 = sphi %s2244_s19, %s2664_s19   ;;  %s2148_s18 = sphi %s2242_s18, %s2663_s18   ;;  %s2144_s17 = sphi %s2240_s17, %s2662_s17  }
  0x10   : > { %p1601_p0 = scmp.ge.s32.totalorder %s2164_s22, 1  ;;  %p2274_p1 = scmp.eq.s32.totalorder %s2628_s23, 0 }
  0x11   : > { %p322_p2 = scmp.lt.s32.totalorder %s2164_s22, 3  ;;  %s2166_s26 = smov [#allocation5]  }
  0x12   : > { %s2640_s24 = scalar_select %p2274_p1, 1, 0 }
  0x13   : > { %p2279_p3 = pnand %p1601_p0, %p322_p2  ;;  %s335_s27 = sshll.u32 %s2166_s26, 4  ;;  %s336_s27 = int_to_ptr.vmem [resolvable:$true] %s335_s27 }
  0x14   : > { %s2167_s29 = smov [#allocation8]   ;;  %s2168_s12 = smov [#allocation7]  }
  0x15   : > { %s2641_s25 = scalar_select %p2279_p3, 1, 0 }
  0x16   : > { %p1791_p5 = pneg %p2279_p3  ;;  %s364_s30 = sshll.u32 %s2167_s29, 4  ;;  %s2292_s30 = int_to_ptr.vmem [resolvable:$true] %s364_s30 }
  0x17   : > { %s2294_s13 = sshll.u32 %s2168_s12, 4  ;;  %s2643_s1 = sld [smem:[#allocation20_spill]]  ;;  %s349_s13 = int_to_ptr.vmem [resolvable:$true] %s2294_s13 }
  0x18   : > { %p2288_p6 = pnand %p1791_p5, %p2274_p1 }
  0x1a   : > { %p2304_p8 = pneg %p2288_p6 }
  0x1d   : > { %s1900_s16 = scalar_lea.hbm %s2643_s1, 64 }
  0x1e   : > { %p1901_p7 = scmp.ne.s32.totalorder %s2643_s1, %s1900_s16  ;;  %p1907_p11 = scmp.lt.u32.totalorder %s1900_s16, %s2643_s1 }
  0x20   : > { %p1903_p9 = pnand %p2304_p8, %p1901_p7 }
  0x22   : > { %p1904_p10 = pneg %p1903_p9 }
  0x24   : > { %p1909_p12 = pnand %p1907_p11, %p1904_p10 }
  0x26   : > { %1912 = shalt.err (!%p1909_p12)
}
  0x27   : > { %s1913_s14 = scalar_lea.vmem %s336_s27, 64  ;;  %p1921_p5 = scmp.lt.s32.totalorder %s336_s27, %s336_s27 }
  0x28   : > { %p1914_p13 = scmp.ne.s32.totalorder %s336_s27, %s1913_s14  ;;  %p1922_p4 = scmp.lt.s32.totalorder %s1913_s14, %s1913_s14 }
  0x2a   : > { %p1916_p0 = pnand %p1914_p13, %p2304_p8  ;;  %p1923_p3 = por %p1922_p4, %p1921_p5 }
  0x2c   : > { %p1917_p2 = pneg %p1916_p0 }
  0x2e   : > { %p1924_p1 = pnand %p1923_p3, %p1917_p2 }
  0x30   : > { %1927 = shalt.err (!%p1924_p1)
}
  0x31   : > { %1794 = dma.hbm_to_vmem [thread:$0]  (!%p2288_p6), %s2643_s1, 64, %s336_s27, [#allocation6]  }
  0x32   : > { %s2645_s5 = sld [smem:[#allocation21_spill]] }
  0x38   : > { %s1928_s29 = scalar_lea.hbm %s2645_s5, 512 }
  0x39   : > { %p1929_p7 = scmp.ne.s32.totalorder %s2645_s5, %s1928_s29  ;;  %p1935_p1 = scmp.lt.u32.totalorder %s1928_s29, %s2645_s5 }
  0x3b   : > { %p1931_p9 = pnand %p1929_p7, %p2304_p8 }
  0x3d   : > { %p1932_p4 = pneg %p1931_p9 }
  0x3f   : > { %p1937_p3 = pnand %p1935_p1, %p1932_p4 }
  0x41   : > { %1940 = shalt.err (!%p1937_p3)
}
  0x42   : > { %s1941_s27 = scalar_lea.vmem %s2292_s30, 512  ;;  %p1949_p13 = scmp.lt.s32.totalorder %s2292_s30, %s2292_s30 }
  0x43   : > { %p1942_p10 = scmp.ne.s32.totalorder %s2292_s30, %s1941_s27  ;;  %p1950_p0 = scmp.lt.s32.totalorder %s1941_s27, %s1941_s27 }
  0x45   : > { %p1944_p11 = pnand %p1942_p10, %p2304_p8  ;;  %p1951_p2 = por %p1950_p0, %p1949_p13 }
  0x47   : > { %p1945_p12 = pneg %p1944_p11 }
  0x49   : > { %p1952_p5 = pnand %p1951_p2, %p1945_p12 }
  0x4b   : > { %1955 = shalt.err (!%p1952_p5)
}
  0x4c   : > { %s2169_s20 = smov 64   ;;  %s2170_s10 = smov 4  }
  0x4d   : > { %1800 = dma.hbm_to_vmem [thread:$0]  (!%p2288_p6), %s2645_s5, 512, %s2292_s30, [#allocation9], %s2169_s20, %s2169_s20, %s2170_s10  }
  0x4e   : > { %s1956_s29 = scalar_lea.hbm %s2619_s3, 512 }
  0x4f   : > { %p1957_p7 = scmp.ne.s32.totalorder %s2619_s3, %s1956_s29  ;;  %p1963_p1 = scmp.lt.u32.totalorder %s1956_s29, %s2619_s3 }
  0x51   : > { %p1959_p9 = pnand %p1957_p7, %p2304_p8 }
  0x53   : > { %p1960_p4 = pneg %p1959_p9 }
  0x55   : > { %p1965_p3 = pnand %p1963_p1, %p1960_p4 }
  0x57   : > { %1968 = shalt.err (!%p1965_p3)
}
  0x58   : > { %s1969_s23 = scalar_lea.vmem %s349_s13, 512  ;;  %p1977_p13 = scmp.lt.s32.totalorder %s349_s13, %s349_s13 }
  0x59   : > { %p1970_p10 = scmp.ne.s32.totalorder %s349_s13, %s1969_s23  ;;  %p1978_p0 = scmp.lt.s32.totalorder %s1969_s23, %s1969_s23 }
  0x5b   : > { %p1972_p11 = pnand %p1970_p10, %p2304_p8  ;;  %p1979_p2 = por %p1978_p0, %p1977_p13 }
  0x5d   : > { %p1973_p12 = pneg %p1972_p11 }
  0x5f   : > { %p1980_p5 = pnand %p1979_p2, %p1973_p12 }
  0x61   : > { %1983 = shalt.err (!%p1980_p5)
}
  0x62   : > { %1797 = dma.hbm_to_vmem [thread:$0]  (!%p2288_p6), %s2619_s3, 512, %s349_s13, [#allocation6], %s2169_s20, %s2169_s20, %s2170_s10  }
  0x63   : > { %s2171_s15 = smov [#allocation10]   ;;  %s2172_s26 = smov [#allocation11]  }
  0x64   : > { %s380_s16 = sshll.u32 %s2171_s15, 4  ;;  %s396_s29 = sshll.u32 %s2172_s26, 4  ;;  %s381_s16 = int_to_ptr.vmem [resolvable:$true] %s380_s16  ;;  %s397_s29 = int_to_ptr.vmem [resolvable:$true] %s396_s29 }
  0x65   : > { %s1984_s27 = scalar_lea.hbm %s2623_s7, 512 }
  0x66   : > { %p1985_p7 = scmp.ne.s32.totalorder %s2623_s7, %s1984_s27  ;;  %p1991_p1 = scmp.lt.u32.totalorder %s1984_s27, %s2623_s7 }
  0x68   : > { %p1987_p9 = pnand %p1985_p7, %p2304_p8 }
  0x6a   : > { %p1988_p4 = pneg %p1987_p9 }
  0x6c   : > { %p1993_p3 = pnand %p1991_p1, %p1988_p4 }
  0x6e   : > { %1996 = shalt.err (!%p1993_p3)
}
  0x6f   : > { %s1997_s13 = scalar_lea.vmem %s381_s16, 512  ;;  %p2005_p13 = scmp.lt.s32.totalorder %s381_s16, %s381_s16 }
  0x70   : > { %p1998_p10 = scmp.ne.s32.totalorder %s381_s16, %s1997_s13  ;;  %p2006_p0 = scmp.lt.s32.totalorder %s1997_s13, %s1997_s13 }
  0x72   : > { %p2000_p11 = pnand %p1998_p10, %p2304_p8  ;;  %p2007_p2 = por %p2006_p0, %p2005_p13 }
  0x74   : > { %p2001_p12 = pneg %p2000_p11 }
  0x76   : > { %p2008_p5 = pnand %p2007_p2, %p2001_p12 }
  0x78   : > { %2011 = shalt.err (!%p2008_p5)
}
  0x79   : > { %1803 = dma.hbm_to_vmem [thread:$0]  (!%p2288_p6), %s2623_s7, 512, %s381_s16, [#allocation9], %s2169_s20, %s2169_s20, %s2170_s10  }
  0x7a   : > { %s2012_s26 = scalar_lea.hbm %s2625_s9, 8192 }
  0x7b   : > { %p2013_p7 = scmp.ne.s32.totalorder %s2625_s9, %s2012_s26  ;;  %p2019_p1 = scmp.lt.u32.totalorder %s2012_s26, %s2625_s9 }
  0x7d   : > { %p2015_p9 = pnand %p2013_p7, %p2304_p8 }
  0x7f   : > { %p2016_p4 = pneg %p2015_p9 }
  0x81   : > { %p2021_p3 = pnand %p2019_p1, %p2016_p4 }
  0x83   : > { %2024 = shalt.err (!%p2021_p3)
}
  0x84   : > { %s2025_s1 = scalar_lea.vmem %s397_s29, 8192  ;;  %p2033_p13 = scmp.lt.s32.totalorder %s397_s29, %s397_s29 }
  0x85   : > { %p2026_p10 = scmp.ne.s32.totalorder %s397_s29, %s2025_s1  ;;  %p2034_p0 = scmp.lt.s32.totalorder %s2025_s1, %s2025_s1 }
  0x87   : > { %p2028_p11 = pnand %p2026_p10, %p2304_p8  ;;  %p2035_p2 = por %p2034_p0, %p2033_p13 }
  0x89   : > { %p2029_p12 = pneg %p2028_p11 }
  0x8b   : > { %p2036_p5 = pnand %p2035_p2, %p2029_p12 }
  0x8d   : > { %2039 = shalt.err (!%p2036_p5)
}
  0x8e   : > { %s2173_s20 = smov 512   ;;  %s2174_s11 = smov 32  }
  0x8f   : > { %1806 = dma.hbm_to_vmem [thread:$0]  (!%p2288_p6), %s2625_s9, 8192, %s397_s29, [#allocation12], %s2173_s20, %s2173_s20, %s2174_s11  }
  0x90   : > { %s1600_s13 = sadd.s32 4294967294, %s2164_s22   ;;  %s45_s5 = sadd.s32 1, %s2160_s21 }
  0x91   : > { %s60_s8 = sadd.s32 1, %s2152_s19  ;;  %p47_p8 = scmp.ge.s32.totalorder %s45_s5, 2 }
  0x92   : > { %p67_p7 = scmp.ne.s32.totalorder %s2152_s19, %s2148_s18  ;;  %p68_p9 = scmp.eq.s32.totalorder %s2164_s22, 0 }
  0x93   : > { %p73_p4 = scmp.ne.s32.totalorder %s2148_s18, %s2144_s17  ;;  %s2668_s5 = smov (%p47_p8, %s45_s5), 0 }
  0x94   : > { %p2417_p1 = por %p68_p9, %p67_p7  ;;  %p2647_p3 = scmp.ne.s32.totalorder %s2640_s24, 0 }
  0x95   : > { %s55_s30 = ssub.s32 %s2160_s21, %s2668_s5  ;;  %s2649_s15 = sadd.s32 4294967295, %s2164_s22  }
  0x96   : > { %p2423_p6 = por %p2647_p3, %p73_p4  ;;  %p309_p10 = scmp.eq.s32.totalorder %s2649_s15, 1 }
  0x97   : > { %p58_p11 = scmp.eq.s32.totalorder %s55_s30, 0  ;;  %p315_p12 = scmp.eq.s32.totalorder %s1600_s13, 1 }
  0x98   : > { %p2431_p13 = por %p309_p10, %p67_p7  ;;  %p1820_p0 = scmp.lt.s32.totalorder %s2164_s22, 2 }
  0x99   : > { %s2437_s12 = scalar_select %p58_p11, %s2152_s19, %s60_s8  }
  0x9a   : > { %s2650_s26 = scalar_select %p2431_p13, 1, 0 }
  0x9b   : > { %p2439_p2 = por %p315_p12, %p73_p4  ;;  %s413_s27 = sand.u32 1, %s2152_s19  }
  0x9c   : > { %s1608_s23 = sshll.u32 %s413_s27, 2  ;;  %s1609_s1 = sshll.u32 %s2160_s21, 6 }
  0x9d   : > { %s2651_s14 = scalar_select %p2439_p2, 1, 0 }
  0x9e   : > { %s2448_s10 = scalar_lea.hbm %s2616_s0, %s1609_s1  ;;  %s417_s16 = scalar_lea.vmem [#allocation2], %s1608_s23 }
  0x9f   : > { %s426_s13 = sshll.u32 %s417_s16, 4  ;;  %p2454_p5 = pnand %p1820_p0, %p2417_p1  ;;  %s2450_s13 = int_to_ptr.vmem [resolvable:$true] %s426_s13 }
  0xa0   : > { %s414_s30 = scalar_lea.sflag [#allocation3], %s413_s27  ;;  %s2040_s15 = scalar_lea.hbm %s2448_s10, 64 }
  0xa1   : > { %p2041_p8 = scmp.ne.s32.totalorder %s2448_s10, %s2040_s15  ;;  %p2042_p7 = pneg %p2454_p5 }
  0xa2   : > { %s2045_s20 = scalar_lea.hbm %s2616_s0, 128  ;;  %p2046_p1 = scmp.lt.u32.totalorder %s2448_s10, %s2616_s0 }
  0xa3   : > { %p2043_p9 = pnand %p2042_p7, %p2041_p8  ;;  %p2047_p3 = scmp.lt.u32.totalorder %s2045_s20, %s2040_s15 }
  0xa4   : > { %p2049_p11 = scmp.lt.u32.totalorder %s2040_s15, %s2448_s10 }
  0xa5   : > { %p2044_p4 = pneg %p2043_p9  ;;  %p2048_p10 = por %p2047_p3, %p2046_p1 }
  0xa7   : > { %p2050_p12 = por %p2049_p11, %p2048_p10 }
  0xa9   : > { %p2051_p0 = pnand %p2050_p12, %p2044_p4 }
  0xab   : > { %2054 = shalt.err (!%p2051_p0)
}
  0xac   : > { %s2055_s27 = scalar_lea.vmem %s2450_s13, 64  ;;  %s2175_s16 = smov [#allocation2]  }
  0xad   : > { %p2056_p8 = scmp.ne.s32.totalorder %s2450_s13, %s2055_s27  ;;  %s2060_s23 = sshll.u32 %s2175_s16, 4  ;;  %s2061_s23 = int_to_ptr.vmem [resolvable:$false] %s2060_s23 }
  0xae   : > { %s2062_s1 = scalar_lea.vmem %s2061_s23, 128  ;;  %p2063_p13 = scmp.lt.s32.totalorder %s2450_s13, %s2061_s23 }
  0xaf   : > { %p2058_p9 = pnand %p2056_p8, %p2042_p7  ;;  %p2064_p1 = scmp.lt.s32.totalorder %s2062_s1, %s2055_s27 }
  0xb1   : > { %p2059_p2 = pneg %p2058_p9  ;;  %p2065_p3 = por %p2064_p1, %p2063_p13 }
  0xb3   : > { %p2066_p10 = pnand %p2065_p3, %p2059_p2 }
  0xb5   : > { %2069 = shalt.err (!%p2066_p10)
}
  0xb6   : > { %1810 = dma.hbm_to_vmem [thread:$0]  (!%p2454_p5), %s2448_s10, 64, %s2450_s13, %s414_s30  }
  0xb7   : > { %p2653_p4 = scmp.ne.s32.totalorder %s2641_s25, 0 }
  0xb8   : > { %s2486_s15 = sand.u32 (!%p2653_p4), 1, %s2148_s18  }
  0xb9   : > { %435 = sbr.rel (%p2653_p4) target bundleno = 1341 (0x53d), region = 64  ;;  %s1611_s20 = sshll.u32 (!%p2653_p4), %s2486_s15, 2 }
  0xba   : > { %s438_s28 = scalar_lea.sflag (!%p2653_p4), [#allocation3], %s2486_s15  ;;  %s441_s11 = scalar_lea.vmem (!%p2653_p4), [#allocation2], %s1611_s20 }
  0xc0   : > { %2123 = dma.done.wait (%p2423_p6), %s438_s28, 64  }
  0xc1   : > { %2125 = vsyncadd (%p2423_p6), %s438_s28, 4294967232  ;;  %p2654_p13 = scmp.ne.s32.totalorder %s2640_s24, 0 }
  0xc3   : > { %2127 = dma.done.wait (%p2654_p13), [#allocation6], 576  }
  0xc4   : > { %2129 = vsyncadd (%p2654_p13), [#allocation6], 4294966720 }
  0xc5   : > { %2131 = dma.done.wait (%p2654_p13), [#allocation9], 1024  }
  0xc6   : > { %2133 = vsyncadd (%p2654_p13), [#allocation9], 4294966272 }
  0xc7   : > { %2135 = dma.done.wait (%p2654_p13), [#allocation12], 8192  }
  0xc8   : > { %2137 = vsyncadd (%p2654_p13), [#allocation12], 4294959104  ;;  %v2176_v0 = vmov 0.0   ;;  %vm2177_vm0 = vmmov 0   ;;  %vm527_vm1 = vcmask 1043456   ;;  %v1888_v3 = vld [vmem:[#allocation7] sm:$0xff]  }
  0xc9   : > { %1725 = vmatprep.subr.bf16.mxu0 %v2176_v0  ;;  %1727 = vmatprep.mubr.msk.bf16.mxu0 %vm2177_vm0, %v2176_v0  ;;  %v515_v1 = vld [vmem:[#allocation5] sm:$0xf]  ;;  %v514_v4 = vld [vmem:[%s441_s11] sm:$0xf]  ;;  %vm523_vm2 = vcmask 64512   ;;  %v1889_v5 = vld [vmem:[#allocation7 + $0x8] sm:$0xff]  }
  0xca   : > { %1731 = vmatprep.subr.bf16.mxu1 %v2176_v0  ;;  %1739 = vmatprep.mubr.msk.bf16.mxu1 %vm2177_vm0, %v2176_v0  ;;  %v529_v2 = vsel %vm527_vm1, %v515_v1, 0  ;;  %v1890_v6 = vld [vmem:[#allocation7 + $0x10] sm:$0xff]   ;;  %v1891_v7 = vld [vmem:[#allocation7 + $0x18] sm:$0xff]   ;;  %v1892_v8 = vld [vmem:[#allocation8] sm:$0xff]   ;;  %vm612_vm3 = vcmask 523264   ;;  %s2655_s16 = sld [smem:[#allocation22_spill]] }
  0xcb   : > { %1726 = vmatpush3.bf16.msra.mxu0 %v529_v2  ;;  %1732 = vmatpush3.bf16.msra.mxu1 %v1888_v3  ;;  %v1893_v9 = vld [vmem:[#allocation8 + $0x8] sm:$0xff]   ;;  %v1618_v10 = vld [vmem:[%s2618_s2] ss:$0 sm:$0xff]  ;;  %v1895_v19 = vld [vmem:[#allocation8 + $0x18] sm:$0xff]   ;;  %s2656_s20 = sld [smem:[#allocation23_spill]]  ;;  %s1617_s28 = sshll.u32 %s2486_s15, 6 }
  0xcc   : > { %1743 = vmatprep.subr.bf16.mxu0 %v2176_v0  ;;  %1733 = vmatprep.subr.bf16.mxu1 %v2176_v0  ;;  %v1894_v18 = vld [vmem:[#allocation8 + $0x10] sm:$0xff]   ;;  %v1896_v20 = vld [vmem:[#allocation10] sm:$0xff]   ;;  %v1897_v21 = vld [vmem:[#allocation10 + $0x8] sm:$0xff]   ;;  %s2552_s11 = scalar_lea.vmem [#allocation13], %s1617_s28  ;;  %s2657_s24 = sld [smem:[#allocation19_spill]] }
  0xcd   : > { %v1620_v22 = vld [vmem:[%s2620_s4] ss:$0 sm:$0xff]  ;;  %v1899_v31 = vld [vmem:[#allocation10 + $0x18] sm:$0xff]   ;;  %v826_v32 = vld [vmem:[#allocation11] sm:$0xff]  ;;  %s1465_s29 = sshll.u32 %s2552_s11, 4  ;;  %s2658_s8 = sld [smem:[#allocation24_spill]]  ;;  %s2565_s29 = int_to_ptr.vmem [resolvable:$true] %s1465_s29 }
  0xce   : > { %1728 = vmatmul.mubr.msk.bf16.vlgmr.msra.gmra.mrb[0].mxu0 %vm523_vm2, %v514_v4  ;;  %v1898_v30 = vld [vmem:[#allocation10 + $0x10] sm:$0xff]   ;;  %v830_v33 = vld [vmem:[#allocation11 + $0x20] sm:$0xff]  ;;  %v827_v34 = vld [vmem:[#allocation11 + $0x8] sm:$0xff]  ;;  %s1449_s27 = scalar_lea.sflag [#allocation4], %s2486_s15  ;;  %p2659_p2 = scmp.ne.s32.totalorder %s2650_s26, 0 }
  0xcf   : > { %1751 = vmatprep.mubr.msk.bf16.mxu0 %vm2177_vm0, %v2176_v0  ;;  %1734 = vmatpush3.bf16.msra.mxu1 %v1889_v5  ;;  %v1638_v35 = vcombine.low %v826_v32, %v830_v33  ;;  %v1639_v36 = vcombine.high %v826_v32, %v830_v33  ;;  %v831_v37 = vld [vmem:[#allocation11 + $0x28] sm:$0xff]  ;;  %v834_v38 = vld [vmem:[#allocation11 + $0x40] sm:$0xff]  ;;  %s2179_s23 = smov [#allocation13]  }
  0xd0   : > { %1735 = vmatprep.subr.bf16.mxu1 %v2176_v0  ;;  %1744 = vmatpush3.bf16.msra.mxu0 %v1892_v8  ;;  %v838_v39 = vld [vmem:[#allocation11 + $0x60] sm:$0xff]  ;;  %v1640_v40 = vcombine.low %v827_v34, %v831_v37  ;;  %v1641_v41 = vcombine.high %v827_v34, %v831_v37  ;;  %v835_v5 = vld [vmem:[#allocation11 + $0x48] sm:$0xff]  ;;  %s2074_s1 = sshll.u32 %s2179_s23, 4  ;;  %s2075_s1 = int_to_ptr.vmem [resolvable:$false] %s2074_s1 }
  0xd1   : > { %1745 = vmatprep.subr.bf16.mxu0 %v2176_v0  ;;  %v1647_v42 = vcombine.high %v834_v38, %v838_v39  ;;  %v1646_v43 = vcombine.low %v834_v38, %v838_v39  ;;  %v842_v44 = vld [vmem:[#allocation11 + $0x80] sm:$0xff]  ;;  %v883_v34 = vld [vmem:[#allocation11 + $0x1c8] sm:$0xff]  ;;  %p2077_p11 = scmp.lt.s32.totalorder %s2565_s29, %s2075_s1 }
  0xd2   : > { %v846_v45 = vld [vmem:[#allocation11 + $0xa0] sm:$0xff]  ;;  %s1707_s25 = sshll.u32 %s2657_s24, 10 }
  0xd3   : > { %1736 = vmatpush3.bf16.msra.mxu1 %v1890_v6  ;;  %v1655_v46 = vcombine.high %v842_v44, %v846_v45  ;;  %v1654_v47 = vcombine.low %v842_v44, %v846_v45  ;;  %v850_v48 = vld [vmem:[#allocation11 + $0xc0] sm:$0xff]  ;;  %v839_v6 = vld [vmem:[#allocation11 + $0x68] sm:$0xff]  ;;  %v833_v44 = vld [vmem:[#allocation11 + $0x38] sm:$0xff]  ;;  %s2563_s30 = scalar_lea.hbm %s2658_s8, %s1707_s25 }
  0xd4   : > { %1737 = vmatprep.subr.bf16.mxu1 %v2176_v0  ;;  %1746 = vmatpush3.bf16.msra.mxu0 %v1893_v9  ;;  %v854_v49 = vld [vmem:[#allocation11 + $0xe0] sm:$0xff] }
  0xd5   : > { %1747 = vmatprep.subr.bf16.mxu0 %v2176_v0  ;;  %v1663_v50 = vcombine.high %v850_v48, %v854_v49  ;;  %v1662_v51 = vcombine.low %v850_v48, %v854_v49  ;;  %v858_v52 = vld [vmem:[#allocation11 + $0x100] sm:$0xff]  ;;  %v2178_v48 = vmov 0   ;;  %v1632_v49 = vld [vmem:[%s2655_s16] ss:$0 sm:$0xff]  ;;  %s2070_s16 = scalar_lea.vmem %s2565_s29, 1024 }
  0xd6   : > { %v862_v53 = vld [vmem:[#allocation11 + $0x120] sm:$0xff]  ;;  %p2071_p6 = scmp.ne.s32.totalorder %s2565_s29, %s2070_s16 }
  0xd7   : > { %1738 = vmatpush3.bf16.msra.mxu1 %v1891_v7  ;;  %v1671_v54 = vcombine.high %v858_v52, %v862_v53  ;;  %v1670_v55 = vcombine.low %v858_v52, %v862_v53  ;;  %v866_v56 = vld [vmem:[#allocation11 + $0x140] sm:$0xff]  ;;  %v836_v53 = vld [vmem:[#allocation11 + $0x50] sm:$0xff] }
  0xd8   : > { %1755 = vmatprep.subr.bf16.mxu1 %v2176_v0  ;;  %1748 = vmatpush3.bf16.msra.mxu0 %v1894_v18  ;;  %v870_v57 = vld [vmem:[#allocation11 + $0x160] sm:$0xff]  ;;  %p2072_p5 = pnand %p2071_p6, %p2659_p2 }
  0xd9   : > { %1749 = vmatprep.subr.bf16.mxu0 %v2176_v0  ;;  %v1679_v58 = vcombine.high %v866_v56, %v870_v57  ;;  %v1678_v59 = vcombine.low %v866_v56, %v870_v57  ;;  %v874_v60 = vld [vmem:[#allocation11 + $0x180] sm:$0xff]  ;;  %v837_v56 = vld [vmem:[#allocation11 + $0x58] sm:$0xff] }
  0xda   : > { %v878_v61 = vld [vmem:[#allocation11 + $0x1a0] sm:$0xff]  ;;  %v841_v57 = vld [vmem:[#allocation11 + $0x78] sm:$0xff]  ;;  %p2073_p7 = pneg %p2072_p5 }
  0xdb   : > { %v1687_v62 = vcombine.high %v874_v60, %v878_v61  ;;  %v1686_v63 = vcombine.low %v874_v60, %v878_v61  ;;  %v882_v32 = vld [vmem:[#allocation11 + $0x1c0] sm:$0xff] }
  0xdc   : > { %1750 = vmatpush3.bf16.msra.mxu0 %v1895_v19  ;;  %v859_v19 = vld [vmem:[#allocation11 + $0x108] sm:$0xff]  ;;  %v886_v33 = vld [vmem:[#allocation11 + $0x1e0] sm:$0xff] }
  0xdd   : > { %1252 = vmatprep.subr.bf16.mxu0 %v1639_v36  ;;  %v887_v36 = vld [vmem:[#allocation11 + $0x1e8] sm:$0xff]  ;;  %v1694_v37 = vcombine.low %v882_v32, %v886_v33 }
  0xde   : > { %v1696_v38 = vcombine.low %v883_v34, %v887_v36  ;;  %v1697_v39 = vcombine.high %v883_v34, %v887_v36  ;;  %v881_v34 = vld [vmem:[#allocation11 + $0x1b8] sm:$0xff] }
 0x1a1   : > { %v565_v11 = vpop.f32.mrb[0].mxu0 }
 0x1a2   : > { %v566_v12 = vadd.f32 %v1618_v10, %v565_v11  ;;  %v1729_v13 = vpop.f32.mrb[1].mxu0  ;;  %v1649_v10 = vcombine.high %v835_v5, %v839_v6  ;;  %v843_v11 = vld [vmem:[#allocation11 + $0x88] sm:$0xff] }
 0x1a3   : > { %v568_v14 = vpop.f32.mrb[2].mxu0  ;;  %v1648_v13 = vcombine.low %v835_v5, %v839_v6 }
 0x1a4   : > { %v571_v15 = vmax.f32 %v566_v12, 0.0  ;;  %v1730_v16 = vpop.f32.mrb[3].mxu0  ;;  %v847_v12 = vld [vmem:[#allocation11 + $0xa8] sm:$0xff] }
 0x1a5   : > { %v1657_v14 = vcombine.high %v843_v11, %v847_v12  ;;  %v855_v16 = vld [vmem:[#allocation11 + $0xe8] sm:$0xff] }
 0x1a6   : > { %v572_v17 = vpack.c.bf16 %v571_v15, %v571_v15  ;;  %v851_v15 = vld [vmem:[#allocation11 + $0xc8] sm:$0xff] }
 0x1a7   : > { %v1665_v18 = vcombine.high %v851_v15, %v855_v16 }
 0x1a8   : > { %1740 = vmatmul.mubr.msk.bf16.vlgmr.msra.gmra.mrb[0].mxu1 %vm612_vm3, %v572_v17  ;;  %v1656_v17 = vcombine.low %v843_v11, %v847_v12 }
 0x1a9   : > { %1763 = vmatprep.mubr.msk.bf16.mxu1 %vm2177_vm0, %v2176_v0  ;;  %1756 = vmatpush3.bf16.msra.mxu1 %v1896_v20  ;;  %v863_v20 = vld [vmem:[#allocation11 + $0x128] sm:$0xff] }
 0x1aa   : > { %1757 = vmatprep.subr.bf16.mxu1 %v2176_v0 }
 0x1ad   : > { %1758 = vmatpush3.bf16.msra.mxu1 %v1897_v21  ;;  %v1664_v21 = vcombine.low %v851_v15, %v855_v16  ;;  %v860_v15 = vld [vmem:[#allocation11 + $0x110] sm:$0xff] }
 0x1ae   : > { %1759 = vmatprep.subr.bf16.mxu1 %v2176_v0  ;;  %v864_v16 = vld [vmem:[#allocation11 + $0x130] sm:$0xff] }
 0x1b1   : > { %1760 = vmatpush3.bf16.msra.mxu1 %v1898_v30 }
 0x1b2   : > { %1761 = vmatprep.subr.bf16.mxu1 %v2176_v0  ;;  %v1626_v0 = vld [vmem:[%s2622_s6] ss:$0 sm:$0xff] }
 0x1b5   : > { %1762 = vmatpush3.bf16.msra.mxu1 %v1899_v31 }
 0x1b6   : > { %1293 = vmatprep.subr.bf16.mxu1 %v1641_v41  ;;  %v832_v41 = vld [vmem:[#allocation11 + $0x30] sm:$0xff] }
 0x27b   : > { %v650_v23 = vpop.f32.mrb[0].mxu1 }
 0x27c   : > { %v651_v24 = vadd.f32 %v1620_v22, %v650_v23  ;;  %v1741_v25 = vpop.f32.mrb[1].mxu1  ;;  %v1673_v22 = vcombine.high %v859_v19, %v863_v20  ;;  %v867_v23 = vld [vmem:[#allocation11 + $0x148] sm:$0xff] }
 0x27d   : > { %v653_v26 = vpop.f32.mrb[2].mxu1  ;;  %v1672_v25 = vcombine.low %v859_v19, %v863_v20 }
 0x27e   : > { %v656_v27 = vmax.f32 %v651_v24, 0.0  ;;  %v1742_v28 = vpop.f32.mrb[3].mxu1  ;;  %v871_v24 = vld [vmem:[#allocation11 + $0x168] sm:$0xff] }
 0x27f   : > { %v1681_v26 = vcombine.high %v867_v23, %v871_v24  ;;  %v879_v28 = vld [vmem:[#allocation11 + $0x1a8] sm:$0xff] }
 0x280   : > { %v657_v29 = vpack.c.bf16 %v656_v27, %v656_v27  ;;  %v875_v27 = vld [vmem:[#allocation11 + $0x188] sm:$0xff] }
 0x281   : > { %v1689_v30 = vcombine.high %v875_v27, %v879_v28  ;;  %v1688_v31 = vcombine.low %v875_v27, %v879_v28  ;;  %v1674_v27 = vcombine.low %v860_v15, %v864_v16 }
 0x282   : > { %1752 = vmatmul.mubr.msk.bf16.vlgmr.msra.gmra.mrb[4].mxu0 %vm612_vm3, %v657_v29  ;;  %v1680_v29 = vcombine.low %v867_v23, %v871_v24  ;;  %v868_v23 = vld [vmem:[#allocation11 + $0x150] sm:$0xff] }
 0x283   : > { %1253 = vmatpush1.bf16.msra.mxu0 %v1638_v35  ;;  %v1695_v35 = vcombine.high %v882_v32, %v886_v33  ;;  %1284 = vmatprep.mubr.bf16.mxu0 %v2178_v48  ;;  %v872_v24 = vld [vmem:[#allocation11 + $0x170] sm:$0xff]  ;;  %v877_v33 = vld [vmem:[#allocation11 + $0x198] sm:$0xff] }
 0x284   : > { %1254 = vmatprep.subr.bf16.mxu0 %v1647_v42  ;;  %v829_v42 = vld [vmem:[#allocation11 + $0x18] sm:$0xff]  ;;  %v880_v32 = vld [vmem:[#allocation11 + $0x1b0] sm:$0xff] }
 0x287   : > { %1255 = vmatpush1.bf16.msra.mxu0 %v1646_v43 }
 0x288   : > { %1256 = vmatprep.subr.bf16.mxu0 %v1655_v46  ;;  %v1644_v46 = vcombine.low %v829_v42, %v833_v44 }
 0x28b   : > { %1257 = vmatpush1.bf16.msra.mxu0 %v1654_v47  ;;  %v1645_v47 = vcombine.high %v829_v42, %v833_v44  ;;  %v889_v42 = vld [vmem:[#allocation11 + $0x1f8] sm:$0xff]  ;;  %v1692_v44 = vcombine.low %v877_v33, %v881_v34 }
 0x28c   : > { %1258 = vmatprep.subr.bf16.mxu0 %v1663_v50 }
 0x28f   : > { %1259 = vmatpush1.bf16.msra.mxu0 %v1662_v51 }
 0x290   : > { %1260 = vmatprep.subr.bf16.mxu0 %v1671_v54 }
 0x293   : > { %1261 = vmatpush1.bf16.msra.mxu0 %v1670_v55  ;;  %v840_v55 = vld [vmem:[#allocation11 + $0x70] sm:$0xff] }
 0x294   : > { %1262 = vmatprep.subr.bf16.mxu0 %v1679_v58  ;;  %v1651_v61 = vcombine.high %v836_v53, %v840_v55 }
 0x297   : > { %1263 = vmatpush1.bf16.msra.mxu0 %v1678_v59 }
 0x298   : > { %1264 = vmatprep.subr.bf16.mxu0 %v1687_v62  ;;  %v1653_v62 = vcombine.high %v837_v56, %v841_v57 }
 0x29b   : > { %1265 = vmatpush1.bf16.msra.mxu0 %v1686_v63  ;;  %v844_v63 = vld [vmem:[#allocation11 + $0x90] sm:$0xff] }
 0x29c   : > { %1266 = vmatprep.subr.bf16.mxu0 %v1695_v35  ;;  %v1682_v35 = vcombine.low %v868_v23, %v872_v24 }
 0x29f   : > { %1267 = vmatpush1.bf16.msra.mxu0 %v1694_v37 }
 0x355   : > { %v734_v1 = vpop.f32.mrb[4].mxu0 }
 0x356   : > { %v735_v2 = vadd.f32 %v1626_v0, %v734_v1  ;;  %v1753_v3 = vpop.f32.mrb[5].mxu0  ;;  %v848_v0 = vld [vmem:[#allocation11 + $0xb0] sm:$0xff]  ;;  %v845_v1 = vld [vmem:[#allocation11 + $0x98] sm:$0xff] }
 0x357   : > { %v737_v4 = vpop.f32.mrb[6].mxu0  ;;  %v1650_v3 = vcombine.low %v836_v53, %v840_v55  ;;  %v1659_v5 = vcombine.high %v844_v63, %v848_v0  ;;  %v1658_v11 = vcombine.low %v844_v63, %v848_v0  ;;  %v890_v53 = vld [vmem:[%s2656_s20] sm:$0xff]  ;;  %s2076_s20 = scalar_lea.vmem %s2075_s1, 2048 }
 0x358   : > { %v740_v7 = vmax.f32 %v735_v2, 0.0  ;;  %v1754_v8 = vpop.f32.mrb[7].mxu0  ;;  %v849_v2 = vld [vmem:[#allocation11 + $0xb8] sm:$0xff]  ;;  %v1652_v4 = vcombine.low %v837_v56, %v841_v57  ;;  %p2078_p12 = scmp.lt.s32.totalorder %s2076_s20, %s2070_s16 }
 0x359   : > { %v1661_v6 = vcombine.high %v845_v1, %v849_v2  ;;  %v856_v8 = vld [vmem:[#allocation11 + $0xf0] sm:$0xff]  ;;  %v1660_v12 = vcombine.low %v845_v1, %v849_v2 }
 0x35a   : > { %v741_v9 = vpack.c.bf16 %v740_v7, %v740_v7  ;;  %v852_v7 = vld [vmem:[#allocation11 + $0xd0] sm:$0xff]  ;;  %p2079_p0 = por %p2078_p12, %p2077_p11 }
 0x35b   : > { %v1666_v19 = vcombine.low %v852_v7, %v856_v8 }
 0x35c   : > { %1764 = vmatmul.mubr.msk.bf16.vlgmr.msra.gmra.mrb[4].mxu1 %vm612_vm3, %v741_v9  ;;  %v853_v9 = vld [vmem:[#allocation11 + $0xd8] sm:$0xff]  ;;  %p2080_p8 = pnand %p2079_p0, %p2073_p7 }
 0x35d   : > { %1294 = vmatpush1.bf16.msra.mxu1 %v1640_v40  ;;  %v828_v40 = vld [vmem:[#allocation11 + $0x10] sm:$0xff]  ;;  %1325 = vmatprep.mubr.bf16.mxu1 %v2178_v48 }
 0x35e   : > { %1295 = vmatprep.subr.bf16.mxu1 %v1649_v10  ;;  %v1643_v43 = vcombine.high %v828_v40, %v832_v41  ;;  %v1642_v45 = vcombine.low %v828_v40, %v832_v41  ;;  %v857_v10 = vld [vmem:[#allocation11 + $0xf8] sm:$0xff]  ;;  %v888_v40 = vld [vmem:[#allocation11 + $0x1f0] sm:$0xff] }
 0x35f   : > { %v1668_v20 = vcombine.low %v853_v9, %v857_v10  ;;  %v885_v41 = vld [vmem:[#allocation11 + $0x1d8] sm:$0xff] }
 0x360   : > { %1334 = vmatprep.subr.bf16.mxu0 %v1643_v43 }
 0x361   : > { %1296 = vmatpush1.bf16.msra.mxu1 %v1648_v13  ;;  %v1667_v13 = vcombine.high %v852_v7, %v856_v8 }
 0x362   : > { %1297 = vmatprep.subr.bf16.mxu1 %v1657_v14  ;;  %v1669_v14 = vcombine.high %v853_v9, %v857_v10 }
 0x365   : > { %1298 = vmatpush1.bf16.msra.mxu1 %v1656_v17  ;;  %v861_v17 = vld [vmem:[#allocation11 + $0x118] sm:$0xff] }
 0x366   : > { %1299 = vmatprep.subr.bf16.mxu1 %v1665_v18  ;;  %v865_v18 = vld [vmem:[#allocation11 + $0x138] sm:$0xff] }
 0x367   : > { %v1676_v28 = vcombine.low %v861_v17, %v865_v18 }
 0x369   : > { %1300 = vmatpush1.bf16.msra.mxu1 %v1664_v21  ;;  %v1675_v21 = vcombine.high %v860_v15, %v864_v16 }
 0x36a   : > { %1301 = vmatprep.subr.bf16.mxu1 %v1673_v22  ;;  %v1677_v22 = vcombine.high %v861_v17, %v865_v18 }
 0x36d   : > { %1302 = vmatpush1.bf16.msra.mxu1 %v1672_v25  ;;  %v869_v25 = vld [vmem:[#allocation11 + $0x158] sm:$0xff] }
 0x36e   : > { %1303 = vmatprep.subr.bf16.mxu1 %v1681_v26  ;;  %v873_v26 = vld [vmem:[#allocation11 + $0x178] sm:$0xff] }
 0x36f   : > { %v1684_v36 = vcombine.low %v869_v25, %v873_v26 }
 0x371   : > { %1304 = vmatpush1.bf16.msra.mxu1 %v1680_v29  ;;  %v1683_v29 = vcombine.high %v868_v23, %v872_v24 }
 0x372   : > { %1305 = vmatprep.subr.bf16.mxu1 %v1689_v30  ;;  %v1685_v30 = vcombine.high %v869_v25, %v873_v26 }
 0x375   : > { %1306 = vmatpush1.bf16.msra.mxu1 %v1688_v31  ;;  %v876_v31 = vld [vmem:[#allocation11 + $0x190] sm:$0xff] }
 0x376   : > { %1307 = vmatprep.subr.bf16.mxu1 %v1697_v39  ;;  %v1691_v37 = vcombine.high %v876_v31, %v880_v32  ;;  %v884_v39 = vld [vmem:[#allocation11 + $0x1d0] sm:$0xff]  ;;  %v1690_v43 = vcombine.low %v876_v31, %v880_v32 }
 0x379   : > { %1308 = vmatpush1.bf16.msra.mxu1 %v1696_v38  ;;  %v1693_v38 = vcombine.high %v877_v33, %v881_v34 }
 0x37a   : > { %1375 = vmatprep.subr.bf16.mxu1 %v1645_v47  ;;  %v1698_v47 = vcombine.low %v884_v39, %v888_v40 }
 0x42f   : > { %v818_v50 = vpop.f32.mrb[4].mxu1 }
 0x430   : > { %v819_v51 = vadd.f32 %v1632_v49, %v818_v50  ;;  %v1765_v52 = vpop.f32.mrb[5].mxu1  ;;  %v892_v49 = vlaneseq }
 0x431   : > { %v821_v54 = vpop.f32.mrb[6].mxu1 }
 0x432   : > { %v824_v58 = vmax.f32 %v819_v51, 0.0  ;;  %v1766_v59 = vpop.f32.mrb[7].mxu1  ;;  %v893_v50 = vshrl.u32 %v892_v49, 7 }
 0x434   : > { %v2542_v60 = vpack.c.bf16 %v824_v58, %v824_v58  ;;  %v894_v51 = vsub.s32 0, %v893_v50  ;;  %v902_v52 = vsub.s32 2, %v893_v50  ;;  %v898_v54 = vsub.s32 1, %v893_v50 }
 0x435   : > { %v906_v55 = vsub.s32 3, %v893_v50  ;;  %v922_v15 = vsub.s32 7, %v893_v50 }
 0x436   : > { %1285 = vmatmul.mubr.bf16.vlgmr.msra.gmra.mrb[8].mxu0 %v2542_v60  ;;  %1326 = vmatmul.mubr.bf16.vlgmr.msra.gmra.mrb[8].mxu1 %v2542_v60  ;;  %v895_v56 = vrot.slane %v890_v53, %v894_v51  ;;  %v903_v57 = vrot.slane %v890_v53, %v902_v52  ;;  %v899_v58 = vrot.slane %v890_v53, %v898_v54 }
 0x437   : > { %1335 = vmatpush1.bf16.msra.mxu0 %v1642_v45  ;;  %1376 = vmatpush1.bf16.msra.mxu1 %v1644_v46  ;;  %v1699_v45 = vcombine.high %v884_v39, %v888_v40  ;;  %v1701_v46 = vcombine.high %v885_v41, %v889_v42  ;;  %v907_v59 = vrot.slane %v890_v53, %v906_v55 }
 0x438   : > { %1336 = vmatprep.subr.bf16.mxu0 %v1651_v61  ;;  %1377 = vmatprep.subr.bf16.mxu1 %v1653_v62 }
 0x439   : > { %1366 = vmatprep.mubr.bf16.mxu0 %v2178_v48  ;;  %1407 = vmatprep.mubr.bf16.mxu1 %v2178_v48  ;;  %v1700_v48 = vcombine.low %v885_v41, %v889_v42 }
 0x43b   : > { %1337 = vmatpush1.bf16.msra.mxu0 %v1650_v3  ;;  %1378 = vmatpush1.bf16.msra.mxu1 %v1652_v4 }
 0x43c   : > { %1338 = vmatprep.subr.bf16.mxu0 %v1659_v5  ;;  %1379 = vmatprep.subr.bf16.mxu1 %v1661_v6 }
 0x43f   : > { %1339 = vmatpush1.bf16.msra.mxu0 %v1658_v11  ;;  %1380 = vmatpush1.bf16.msra.mxu1 %v1660_v12  ;;  %v910_v12 = vsub.s32 4, %v893_v50 }
 0x440   : > { %1340 = vmatprep.subr.bf16.mxu0 %v1667_v13  ;;  %1381 = vmatprep.subr.bf16.mxu1 %v1669_v14  ;;  %v918_v13 = vsub.s32 6, %v893_v50  ;;  %v914_v14 = vsub.s32 5, %v893_v50 }
 0x441   : > { %v911_v16 = vrot.slane %v890_v53, %v910_v12 }
 0x442   : > { %v919_v17 = vrot.slane %v890_v53, %v918_v13  ;;  %v915_v18 = vrot.slane %v890_v53, %v914_v14 }
 0x443   : > { %1341 = vmatpush1.bf16.msra.mxu0 %v1666_v19  ;;  %1382 = vmatpush1.bf16.msra.mxu1 %v1668_v20  ;;  %v923_v19 = vrot.slane %v890_v53, %v922_v15 }
 0x444   : > { %1342 = vmatprep.subr.bf16.mxu0 %v1675_v21  ;;  %1383 = vmatprep.subr.bf16.mxu1 %v1677_v22 }
 0x447   : > { %1343 = vmatpush1.bf16.msra.mxu0 %v1674_v27  ;;  %1384 = vmatpush1.bf16.msra.mxu1 %v1676_v28 }
 0x448   : > { %1344 = vmatprep.subr.bf16.mxu0 %v1683_v29  ;;  %1385 = vmatprep.subr.bf16.mxu1 %v1685_v30 }
 0x44b   : > { %1345 = vmatpush1.bf16.msra.mxu0 %v1682_v35  ;;  %1386 = vmatpush1.bf16.msra.mxu1 %v1684_v36 }
 0x44c   : > { %1346 = vmatprep.subr.bf16.mxu0 %v1691_v37  ;;  %1387 = vmatprep.subr.bf16.mxu1 %v1693_v38 }
 0x44f   : > { %1347 = vmatpush1.bf16.msra.mxu0 %v1690_v43  ;;  %1388 = vmatpush1.bf16.msra.mxu1 %v1692_v44 }
 0x450   : > { %1348 = vmatprep.subr.bf16.mxu0 %v1699_v45  ;;  %1389 = vmatprep.subr.bf16.mxu1 %v1701_v46 }
 0x453   : > { %1349 = vmatpush1.bf16.msra.mxu0 %v1698_v47  ;;  %1390 = vmatpush1.bf16.msra.mxu1 %v1700_v48 }
 0x456   : > { %1367 = vmatmul.mubr.bf16.vlgmr.msra.gmra.mrb[12].mxu0 %v2542_v60  ;;  %1408 = vmatmul.mubr.bf16.vlgmr.msra.gmra.mrb[12].mxu1 %v2542_v60 }
 0x509   : > { %v1286_v61 = vpop.f32.mrb[8].mxu0  ;;  %v1327_v62 = vpop.f32.mrb[8].mxu1 }
 0x50a   : > { %v1287_v63 = vadd.f32 %v1286_v61, %v895_v56  ;;  %v1328_v0 = vadd.f32 %v1327_v62, %v903_v57  ;;  %v1288_v60 = vpop.f32.mrb[9].mxu0  ;;  %v1329_v1 = vpop.f32.mrb[9].mxu1 }
 0x50b   : > { %v1289_v2 = vadd.f32 %v1288_v60, %v899_v58  ;;  %v1330_v3 = vadd.f32 %v1329_v1, %v907_v59  ;;  %v1290_v4 = vpop.f32.mrb[10].mxu0  ;;  %v1331_v5 = vpop.f32.mrb[10].mxu1 }
 0x50c   : > { %v1416_v6 = vmax.f32 %v1287_v63, 0.0  ;;  %v1418_v7 = vmax.f32 %v1328_v0, 0.0  ;;  %v1291_v8 = vpop.f32.mrb[11].mxu0  ;;  %v1332_v9 = vpop.f32.mrb[11].mxu1 }
 0x50d   : > { %v1417_v10 = vmax.f32 %v1289_v2, 0.0  ;;  %v1419_v11 = vmax.f32 %v1330_v3, 0.0 }
 0x50e   : > { %1440 = vst [vmem:[%s2552_s11] sm:$0xff] %v1416_v6  ;;  %1442 = vst [vmem:[%s2552_s11 + $0x10] sm:$0xff] %v1418_v7 }
 0x50f   : > { %1441 = vst [vmem:[%s2552_s11 + $0x8] sm:$0xff] %v1417_v10  ;;  %1443 = vst [vmem:[%s2552_s11 + $0x18] sm:$0xff] %v1419_v11 }
 0x529   : > { %v1368_v20 = vpop.f32.mrb[12].mxu0  ;;  %v1409_v21 = vpop.f32.mrb[12].mxu1 }
 0x52a   : > { %v1369_v22 = vadd.f32 %v1368_v20, %v911_v16  ;;  %v1410_v23 = vadd.f32 %v1409_v21, %v919_v17  ;;  %v1370_v24 = vpop.f32.mrb[13].mxu0  ;;  %v1411_v25 = vpop.f32.mrb[13].mxu1 }
 0x52b   : > { %v1371_v26 = vadd.f32 %v1370_v24, %v915_v18  ;;  %v1412_v27 = vadd.f32 %v1411_v25, %v923_v19  ;;  %v1372_v28 = vpop.f32.mrb[14].mxu0  ;;  %v1413_v29 = vpop.f32.mrb[14].mxu1 }
 0x52c   : > { %v1420_v30 = vmax.f32 %v1369_v22, 0.0  ;;  %v1422_v31 = vmax.f32 %v1410_v23, 0.0  ;;  %v1373_v32 = vpop.f32.mrb[15].mxu0  ;;  %v1414_v33 = vpop.f32.mrb[15].mxu1 }
 0x52d   : > { %v1421_v34 = vmax.f32 %v1371_v26, 0.0  ;;  %v1423_v35 = vmax.f32 %v1412_v27, 0.0 }
 0x52e   : > { %1444 = vst [vmem:[%s2552_s11 + $0x20] sm:$0xff] %v1420_v30  ;;  %1446 = vst [vmem:[%s2552_s11 + $0x30] sm:$0xff] %v1422_v31 }
 0x52f   : > { %1445 = vst [vmem:[%s2552_s11 + $0x28] sm:$0xff] %v1421_v34  ;;  %1447 = vst [vmem:[%s2552_s11 + $0x38] sm:$0xff] %v1423_v35 }
 0x530   : > { %2083 = shalt.err (!%p2080_p8)
}
 0x531   : > { %s2084_s15 = scalar_lea.hbm %s2563_s30, 1024  ;;  %s2088_s24 = scalar_lea.hbm %s2658_s8, 2048 }
 0x532   : > { %p2085_p9 = scmp.ne.s32.totalorder %s2563_s30, %s2084_s15  ;;  %p2089_p10 = scmp.lt.u32.totalorder %s2563_s30, %s2658_s8 }
 0x533   : > { %p2090_p4 = scmp.lt.u32.totalorder %s2088_s24, %s2084_s15  ;;  %p2092_p6 = scmp.lt.u32.totalorder %s2084_s15, %s2563_s30 }
 0x534   : > { %p2086_p1 = pnand %p2085_p9, %p2659_p2 }
 0x535   : > { %p2091_p13 = por %p2090_p4, %p2089_p10 }
 0x536   : > { %p2087_p3 = pneg %p2086_p1 }
 0x537   : > { %p2093_p5 = por %p2092_p6, %p2091_p13 }
 0x539   : > { %p2094_p7 = pnand %p2093_p5, %p2087_p3 }
 0x53b   : > { %2097 = shalt.err (!%p2094_p7)
}
 0x53c   : > { %1789 = dma.vmem_to_hbm [thread:$0]  (%p2659_p2), %s2565_s29, 1024, %s2563_s30, %s1449_s27  }
 0x53d PF: > { %s1477_s13 = sand.u32 1, %s2144_s17   ;;  %p2660_p11 = scmp.ne.s32.totalorder %s2651_s14, 0 }
 0x53e   : > { %p2661_p12 = scmp.ge.s32.totalorder %s2164_s22, 2  ;;  %s1478_s16 = scalar_lea.sflag [#allocation4], %s1477_s13 }
 0x540   : > { %p1812_p0 = pnand %p2661_p12, %p2660_p11 }
 0x542   : > { %2139 = dma.done.wait (!%p1812_p0), %s1478_s16, 1024  }
 0x543   : > { %2141 = vsyncadd (!%p1812_p0), %s1478_s16, 4294966272  ;;  %s30_s22 = sadd.s32 1, %s2164_s22   ;;  %s2662_s17 = smov %s2148_s18 }
 0x544   : > { %p27_p8 = scmp.ge.s32.totalorder %s30_s22, 4   ;;  %s2663_s18 = smov %s2152_s19 }
 0x545   : > { %s2664_s19 = smov %s2437_s12  ;;  %s2665_s20 = smov %s2160_s21 }
 0x546   : > { %s2666_s21 = smov %s2668_s5  ;;  %29 = sbr.rel (!%p27_p8) target bundleno = 15 (0xf), region = 133 }
 0x54d   :  { %1483 = vsyncpa [#allocation3], 1 }
 0x54e   :  { %1485 = vsyncpa [#allocation3 + $0x1], 1 }
 0x54f   :  { %1486 = vsyncpa [#allocation6], 1 }
 0x550   :  { %1487 = vsyncpa [#allocation9], 1 }
 0x551   :  { %1488 = vsyncpa [#allocation12], 1 }
 0x552   :  { %1489 = vsyncpa [#allocation4], 1 }
 0x553   :  { %1491 = vsyncpa [#allocation4 + $0x1], 1 }

</bundles_post_ra>
